<compile_context>
chip_gen: v6e
topology: v6e:2x2x1
jax: 0.10.0
libtpu: 0.0.40
codegen_flags: <defaults>
</compile_context>

<pallas_src>
import functools

import jax
import jax.numpy as jnp
from jax.experimental import pallas as pl
from jax.experimental.pallas import tpu as pltpu

_LANE = 128


def _silu(x):
    return x * jax.nn.sigmoid(x)


def _cdiv(a, b):
    return -(-a // b)


def _round_up(v, m):
    return _cdiv(v, m) * m


def _pad_axis(a, axis, multiple):
    pad = (-a.shape[axis]) % multiple
    if pad == 0:
        return a
    widths = [(0, 0)] * a.ndim
    widths[axis] = (0, pad)
    return jnp.pad(a, widths)


# ----------------------------------------------------------------------------
# Kernels
# ----------------------------------------------------------------------------
def _adapter_kernel(x_ref, wd_ref, bd_ref, wu_ref, bu_ref, o_ref, *, residual):
    x = x_ref[...]
    # Matmuls in the (possibly bf16) weight dtype with f32 accumulation;
    # bias / SiLU / residual stay in f32.  Bias add hoisted: once per tile.
    down = jnp.dot(x.astype(wd_ref.dtype), wd_ref[...],
                   preferred_element_type=jnp.float32) + bd_ref[...]
    h = _silu(down).astype(wu_ref.dtype)
    up = jnp.dot(h, wu_ref[...],
                 preferred_element_type=jnp.float32) + bu_ref[...]
    if residual:
        up = up + x.astype(jnp.float32)
    o_ref[...] = up.astype(o_ref.dtype)


def _adapter_extra_kernel(x_ref, xe_ref, wd_ref, bd_ref, we_ref, be_ref,
                          wu1_ref, wu2_ref, bu_ref, o_ref, *, residual):
    x = x_ref[...]
    xe = xe_ref[...]
    down = jnp.dot(x.astype(wd_ref.dtype), wd_ref[...],
                   preferred_element_type=jnp.float32) + bd_ref[...]
    edown = jnp.dot(xe.astype(we_ref.dtype), we_ref[...],
                    preferred_element_type=jnp.float32) + be_ref[...]
    # up_project(cat([silu(down), silu(edown)], -1))
    #   == silu(down) @ Wu1 + silu(edown) @ Wu2 + bu   (Wu pre-split by rows)
    h1 = _silu(down).astype(wu1_ref.dtype)
    h2 = _silu(edown).astype(wu2_ref.dtype)
    up = (jnp.dot(h1, wu1_ref[...], preferred_element_type=jnp.float32)
          + jnp.dot(h2, wu2_ref[...], preferred_element_type=jnp.float32)
          + bu_ref[...])
    if residual:
        up = up + x.astype(jnp.float32)
    o_ref[...] = up.astype(o_ref.dtype)


# ----------------------------------------------------------------------------
# Params
# ----------------------------------------------------------------------------
def init_base_adapter_params(key, size, extra_size=0, reduction_factor=16,
                             extra_reduction_factor=16, out_size=None,
                             init_std=0.01):
    """Deterministic synthetic init matching BaseAdapter.__init__ shapes."""
    if out_size is None:
        out_size = size
    down_dim = int(size // reduction_factor)
    up_in = down_dim
    k0, k1, k2 = jax.random.split(key, 3)
    params = {
        "w_down": init_std * jax.random.normal(k0, (size, down_dim), jnp.float32),
        "b_down": jnp.zeros((1, down_dim), jnp.float32),
    }
    if extra_size > 0:
        edown_dim = int(extra_size // extra_reduction_factor)
        params["w_extra"] = init_std * jax.random.normal(
            k1, (extra_size, edown_dim), jnp.float32)
        params["b_extra"] = jnp.zeros((1, edown_dim), jnp.float32)
        up_in += edown_dim
    params["w_up"] = init_std * jax.random.normal(k2, (up_in, out_size), jnp.float32)
    params["b_up"] = jnp.zeros((1, out_size), jnp.float32)
    return params


def prepare_adapter_params(params, matmul_dtype=None):
    """One-time prep (call once, outside the hot path):
       * zero-pad bottleneck (K) dims AND the output (N) dim to multiples of
         128 (lane-dense MXU K and lane-dense `vst` output stores),
       * pre-split w_up into the [down, extra_down] row blocks,
       * optionally pre-cast weights to `matmul_dtype` (e.g. bf16).
    Zero padding is exact: padded bias lanes are 0, SiLU(0)=0, padded w_up
    rows are 0, and padded output columns are sliced off by the wrapper."""
    wdt = matmul_dtype if matmul_dtype is not None else params["w_down"].dtype
    d = params["w_down"].shape[1]
    out_size = int(params["w_up"].shape[1])
    prep = {
        "out_size": out_size,
        "w_down": _pad_axis(params["w_down"], 1, _LANE).astype(wdt),
        "b_down": _pad_axis(params["b_down"], 1, _LANE).astype(jnp.float32),
        "b_up": _pad_axis(params["b_up"], 1, _LANE).astype(jnp.float32),
    }
    if "w_extra" in params:
        prep["w_extra"] = _pad_axis(params["w_extra"], 1, _LANE).astype(wdt)
        prep["b_extra"] = _pad_axis(params["b_extra"], 1, _LANE).astype(jnp.float32)
        prep["w_up1"] = _pad_axis(_pad_axis(params["w_up"][:d, :], 0, _LANE),
                                  1, _LANE).astype(wdt)
        prep["w_up2"] = _pad_axis(_pad_axis(params["w_up"][d:, :], 0, _LANE),
                                  1, _LANE).astype(wdt)
    else:
        prep["w_up"] = _pad_axis(_pad_axis(params["w_up"], 0, _LANE),
                                 1, _LANE).astype(wdt)
    return prep


# ----------------------------------------------------------------------------
# Hardware-aware tiling
# ----------------------------------------------------------------------------
def _tpu_vmem_and_cores():
    """(physical VMEM bytes per TensorCore, #TensorCores sharing the grid)."""
    vmem_cap = 128 << 20          # v5e/v6e default
    num_tc = 1
    try:
        info = pltpu.get_tpu_info()
        vmem_cap = int(getattr(info, "vmem_capacity_bytes", vmem_cap))
    except Exception:
        pass
    try:
        kind = jax.devices()[0].device_kind.lower()
        if "v7" in kind:          # v7x: 2 TensorCores / chip, 64 MiB VMEM each
            num_tc = 2
    except Exception:
        pass
    return vmem_cap, num_tc


def _choose_tm(M, per_row_bytes, budget_bytes, row_align, num_tc, max_tm=2048):
    """Largest row tile (multiple of row_align) fitting the VMEM tile budget.
    On 2-TC chips (v7x) keep the grid >= 2 steps and even so both cores stay
    busy; on single-TC chips (v5e/v6e) keep one resident tile when possible."""
    M_al = _round_up(max(M, 1), row_align)
    tm = max_tm
    while tm > row_align and tm * per_row_bytes > budget_bytes:
        tm //= 2
    tm = max(row_align, min(tm, M_al))
    if num_tc >= 2:
        steps = _cdiv(M, tm)
        if steps == 1 and M_al > row_align:
            steps = 2
        elif steps > 1 and steps % 2:
            steps += 1
        tm = max(row_align, min(_round_up(_cdiv(M, steps), row_align), M_al))
    return tm


# ----------------------------------------------------------------------------
# Forward
# ----------------------------------------------------------------------------
def base_adapter_forward(x, prep, residual=True, extra=None, tm=None,
                         tile_vmem_budget=None):
    """Pallas implementation of BaseAdapter.forward.

    `prep` must come from prepare_adapter_params (weights padded/pre-split)."""
    orig_shape = x.shape
    size = orig_shape[-1]
    xf = x.reshape(-1, size)
    M = xf.shape[0]

    has_extra = "w_up1" in prep
    if (extra is not None) != has_extra:
        raise ValueError(
            "`extra` input and the adapter's extra branch must both be present "
            "or both be absent (extra given: %s, branch present: %s)"
            % (extra is not None, has_extra))

    out_size = int(prep["out_size"])
    out_pad = prep["b_up"].shape[1]
    if residual and out_size != size:
        raise ValueError("residual add requires out_size == size")

    # Lane-dense output: compute into the 128-padded width, slice the logical
    # width once at the very end.  Exception: residual with a non-128-multiple
    # size keeps the logical width (still a legal full-dim block) so the
    # residual add stays a same-width add.
    out_w = size if (residual and out_pad != size) else out_pad

    wd, bd = prep["w_down"], prep["b_down"]
    bu = prep["b_up"] if out_w == out_pad else prep["b_up"][:, :out_w]
    if has_extra:
        we, be = prep["w_extra"], prep["b_extra"]
        wu1 = prep["w_up1"] if out_w == out_pad else prep["w_up1"][:, :out_w]
        wu2 = prep["w_up2"] if out_w == out_pad else prep["w_up2"][:, :out_w]
    else:
        wu = prep["w_up"] if out_w == out_pad else prep["w_up"][:, :out_w]

    x_bytes = jnp.dtype(x.dtype).itemsize
    d_p = wd.shape[1]

    # Per-row VMEM: double-buffered activation/output row tiles + f32
    # intermediates.  Weights are single-buffered residents (counted once).
    per_row = 2 * (size + out_w) * x_bytes + (d_p + out_w) * 4
    weight_bytes = wd.nbytes + bd.nbytes + bu.nbytes
    flops_per_row = 2 * size * d_p + 2 * d_p * out_w
    trans_per_row = d_p
    io_bytes_per_row = (size + out_w) * x_bytes

    if has_extra:
        extra_size = extra.shape[-1]
        xef = extra.reshape(-1, extra_size)
        if xef.shape[0] != M:
            raise ValueError("extra must have the same leading shape as x")
        e_bytes = jnp.dtype(extra.dtype).itemsize
        ed_p = we.shape[1]
        per_row += 2 * extra_size * e_bytes + ed_p * 4
        weight_bytes += we.nbytes + be.nbytes + wu1.nbytes + wu2.nbytes
        flops_per_row += 2 * extra_size * ed_p + 2 * ed_p * out_w
        trans_per_row += ed_p
        io_bytes_per_row += extra_size * e_bytes
    else:
        weight_bytes += wu.nbytes

    vmem_cap, num_tc = _tpu_vmem_and_cores()
    if tile_vmem_budget is None:
        # Whatever physical VMEM is left after the resident weights + slack.
        tile_vmem_budget = max(4 << 20, vmem_cap - weight_bytes - (8 << 20))

    # Sub-32-bit activations pack along sublanes: keep row tiles packed-dense.
    row_align = 8 * max(1, 4 // x_bytes)
    if tm is None:
        tm = _choose_tm(M, per_row, tile_vmem_budget, row_align, num_tc)
    tm = max(row_align, _round_up(tm, row_align))

    # No wrapper-side row padding: Pallas handles the ragged last block
    # (garbage rows are computed but masked on the output store).
    grid = (_cdiv(M, tm),)

    vmem_limit = weight_bytes + tm * per_row + (4 << 20)
    vmem_limit = int(min(max(vmem_limit, 32 << 20), vmem_cap))

    cost = pl.CostEstimate(
        flops=M * flops_per_row,
        transcendentals=M * trans_per_row,
        bytes_accessed=M * io_bytes_per_row + weight_bytes)

    # Grid-invariant weights/biases: whole array resident in VMEM, single copy
    # (no per-step double buffering).
    resident = pl.BlockSpec(memory_space=pltpu.MemorySpace.VMEM)

    def row(d):
        return pl.BlockSpec((tm, d), lambda i: (i, 0))

    cparams = pltpu.CompilerParams(
        dimension_semantics=("parallel",),
        vmem_limit_bytes=vmem_limit)

    if not has_extra:
        kernel = functools.partial(_adapter_kernel, residual=residual)
        out = pl.pallas_call(
            kernel,
            out_shape=jax.ShapeDtypeStruct((M, out_w), x.dtype),
            grid=grid,
            in_specs=[row(size), resident, resident, resident, resident],
            out_specs=row(out_w),
            compiler_params=cparams,
            cost_estimate=cost,
        )(xf, wd, bd, wu, bu)
    else:
        kernel = functools.partial(_adapter_extra_kernel, residual=residual)
        out = pl.pallas_call(
            kernel,
            out_shape=jax.ShapeDtypeStruct((M, out_w), x.dtype),
            grid=grid,
            in_specs=[row(size), row(extra_size)] + [resident] * 7,
            out_specs=row(out_w),
            compiler_params=cparams,
            cost_estimate=cost,
        )(xf, xef, wd, bd, we, be, wu1, wu2, bu)

    if out_w != out_size:
        out = out[:, :out_size]
    return out.reshape(orig_shape[:-1] + (out_size,))


# ----------------------------------------------------------------------------
# Pure-JAX reference (matches the PyTorch forward)
# ----------------------------------------------------------------------------
def base_adapter_reference(x, params, residual=True, extra=None):
    down = x @ params["w_down"] + params["b_down"][0]
    if extra is not None and "w_extra" in params:
        edown = extra @ params["w_extra"] + params["b_extra"][0]
        down = jnp.concatenate([down, edown], axis=-1)
    h = down * jax.nn.sigmoid(down)
    up = h @ params["w_up"] + params["b_up"][0]
    return x + up if residual else up


if __name__ == "__main__":
    key = jax.random.PRNGKey(0)
    k_x, k_e, k_p1, k_p2, k_p3, k_p4, k_x2 = jax.random.split(key, 7)

    B, S = 2, 9              # 18 rows -> exercises ragged-block / tm selection
    size = 256
    extra_size = 128

    x = jax.random.normal(k_x, (B, S, size), jnp.float32)
    extra = jax.random.normal(k_e, (B, S, extra_size), jnp.float32)

    # Case 1: default adapter (no extra branch), residual=True, f32 matmuls.
    params = init_base_adapter_params(k_p1, size)
    prep = prepare_adapter_params(params)
    out = jax.block_until_ready(base_adapter_forward(x, prep, residual=True))
    ref = base_adapter_reference(x, params, residual=True)
    assert out.shape == (B, S, size)
    assert jnp.allclose(out, ref, atol=5e-5, rtol=5e-5)

    # Case 2: adapter with extra branch, residual=True.
    params_e = init_base_adapter_params(k_p2, size, extra_size=extra_size)
    prep_e = prepare_adapter_params(params_e)
    out_e = jax.block_until_ready(
        base_adapter_forward(x, prep_e, residual=True, extra=extra))
    ref_e = base_adapter_reference(x, params_e, residual=True, extra=extra)
    assert out_e.shape == (B, S, size)
    assert jnp.allclose(out_e, ref_e, atol=5e-5, rtol=5e-5)

    # Case 3: no residual.
    out_nr = jax.block_until_ready(base_adapter_forward(x, prep, residual=False))
    ref_nr = base_adapter_reference(x, params, residual=False)
    assert jnp.allclose(out_nr, ref_nr, atol=5e-5, rtol=5e-5)

    # Case 4: out_size override (192, not a 128-multiple) -> lane-dense padded
    # kernel output + one trailing slice.
    params_o = init_base_adapter_params(k_p3, size, out_size=192)
    prep_o = prepare_adapter_params(params_o)
    out_o = jax.block_until_ready(base_adapter_forward(x, prep_o, residual=False))
    ref_o = base_adapter_reference(x, params_o, residual=False)
    assert out_o.shape == (B, S, 192)
    assert jnp.allclose(out_o, ref_o, atol=5e-5, rtol=5e-5)

    # Case 5: non-128-multiple size WITH residual (logical-width fallback path).
    size2 = 192
    x2 = jax.random.normal(k_x2, (B, S, size2), jnp.float32)
    params_s = init_base_adapter_params(k_p4, size2)
    prep_s = prepare_adapter_params(params_s)
    out_s = jax.block_until_ready(base_adapter_forward(x2, prep_s, residual=True))
    ref_s = base_adapter_reference(x2, params_s, residual=True)
    assert jnp.allclose(out_s, ref_s, atol=5e-5, rtol=5e-5)

    # Case 6: bf16 weights (MXU peak) with f32 activations / accumulation.
    prep_bf = prepare_adapter_params(params_e, matmul_dtype=jnp.bfloat16)
    out_b = jax.block_until_ready(
        base_adapter_forward(x, prep_bf, residual=True, extra=extra))
    assert jnp.allclose(out_b, ref_e, atol=5e-3, rtol=5e-3)

    # Case 7: bf16 activations end-to-end (halves HBM traffic; kernel is
    # HBM-bound), f32-accumulated matmuls, bf16 output.
    out_bb = jax.block_until_ready(
        base_adapter_forward(x.astype(jnp.bfloat16), prep_bf, residual=True,
                             extra=extra.astype(jnp.bfloat16)))
    assert out_bb.dtype == jnp.bfloat16
    assert jnp.allclose(out_bb.astype(jnp.float32), ref_e, atol=3e-2, rtol=3e-2)

    # Case 8: multi-step grid with a ragged last block (800 rows, tm=128 -> 7
    # steps, last block only 32 valid rows; no wrapper-side padding/slicing).
    x_big = jax.random.normal(k_x, (4, 200, size), jnp.float32)
    out_big = jax.block_until_ready(
        base_adapter_forward(x_big, prep, residual=True, tm=128))
    ref_big = base_adapter_reference(x_big, params, residual=True)
    assert jnp.allclose(out_big, ref_big, atol=5e-5, rtol=5e-5)

    print("KERNEL_OK")
</pallas_src>

<mosaic_0001>
module attributes {stable_mosaic.version = 11 : i64} {
  func.func @_adapter_kernel(%arg0: i32, %arg1: memref<24x256xf32, #tpu.memory_space<vmem>>, %arg2: memref<256x128xf32, #tpu.memory_space<vmem>>, %arg3: memref<1x128xf32, #tpu.memory_space<vmem>>, %arg4: memref<128x256xf32, #tpu.memory_space<vmem>>, %arg5: memref<1x256xf32, #tpu.memory_space<vmem>>, %arg6: memref<24x256xf32, #tpu.memory_space<vmem>>) attributes {dimension_semantics = [#tpu.dimension_semantics<parallel>], iteration_bounds = array<i64: 1>, scalar_prefetch = 0 : i64, scratch_operands = 0 : i64, tpu.core_type = #tpu.core_type<tc>, window_params = [{transform_indices = @transform_0, window_bounds = array<i64: 24, 256>}, {pipeline_mode = #tpu.pipeline_mode<synchronous>, transform_indices = @transform_1, window_bounds = array<i64: 256, 128>}, {pipeline_mode = #tpu.pipeline_mode<synchronous>, transform_indices = @transform_2, window_bounds = array<i64: 1, 128>}, {pipeline_mode = #tpu.pipeline_mode<synchronous>, transform_indices = @transform_3, window_bounds = array<i64: 128, 256>}, {pipeline_mode = #tpu.pipeline_mode<synchronous>, transform_indices = @transform_4, window_bounds = array<i64: 1, 256>}, {transform_indices = @transform_5, window_bounds = array<i64: 24, 256>}]} {
    %c0 = arith.constant 0 : index
    %c0_0 = arith.constant 0 : index
    %0 = vector.load %arg1[%c0, %c0_0] : memref<24x256xf32, #tpu.memory_space<vmem>>, vector<24x256xf32>
    %c0_1 = arith.constant 0 : index
    %c0_2 = arith.constant 0 : index
    %1 = vector.load %arg2[%c0_1, %c0_2] : memref<256x128xf32, #tpu.memory_space<vmem>>, vector<256x128xf32>
    %cst = arith.constant dense<0.000000e+00> : vector<24x128xf32>
    %2 = tpu.matmul %0, %1, %cst {dimension_numbers = #tpu.dot_dimension_numbers<[1], [0], [0], [1], [0, 0, 1, 1], [], []>} : vector<24x256xf32>, vector<256x128xf32>, vector<24x128xf32> -> vector<24x128xf32>
    %c0_3 = arith.constant 0 : index
    %c0_4 = arith.constant 0 : index
    %3 = vector.load %arg3[%c0_3, %c0_4] : memref<1x128xf32, #tpu.memory_space<vmem>>, vector<1x128xf32>
    %4 = vector.broadcast %3 : vector<1x128xf32> to vector<24x128xf32>
    %5 = arith.addf %2, %4 : vector<24x128xf32>
    %6 = arith.negf %5 : vector<24x128xf32>
    %7 = math.exp %6 : vector<24x128xf32>
    %cst_5 = arith.constant 1.000000e+00 : f32
    %8 = vector.broadcast %cst_5 : f32 to vector<24x128xf32>
    %9 = arith.addf %8, %7 : vector<24x128xf32>
    %10 = arith.divf %8, %9 : vector<24x128xf32>
    %11 = arith.mulf %5, %10 : vector<24x128xf32>
    %c0_6 = arith.constant 0 : index
    %c0_7 = arith.constant 0 : index
    %12 = vector.load %arg4[%c0_6, %c0_7] : memref<128x256xf32, #tpu.memory_space<vmem>>, vector<128x256xf32>
    %cst_8 = arith.constant dense<0.000000e+00> : vector<24x256xf32>
    %13 = tpu.matmul %11, %12, %cst_8 {dimension_numbers = #tpu.dot_dimension_numbers<[1], [0], [0], [1], [0, 0, 1, 1], [], []>} : vector<24x128xf32>, vector<128x256xf32>, vector<24x256xf32> -> vector<24x256xf32>
    %c0_9 = arith.constant 0 : index
    %c0_10 = arith.constant 0 : index
    %14 = vector.load %arg5[%c0_9, %c0_10] : memref<1x256xf32, #tpu.memory_space<vmem>>, vector<1x256xf32>
    %15 = vector.broadcast %14 : vector<1x256xf32> to vector<24x256xf32>
    %16 = arith.addf %13, %15 : vector<24x256xf32>
    %17 = arith.addf %16, %0 : vector<24x256xf32>
    %c0_11 = arith.constant 0 : index
    %c0_12 = arith.constant 0 : index
    %18 = vector.load %arg6[%c0_11, %c0_12] : memref<24x256xf32, #tpu.memory_space<vmem>>, vector<24x256xf32>
    tpu.vector_store %arg6[%c0_11, %c0_12], %17 {strides = array<i32>} : memref<24x256xf32, #tpu.memory_space<vmem>>, vector<24x256xf32>,
    return
  }
  func.func @transform_0(%arg0: i32) -> (i32, i32) {
    %c0_i32 = arith.constant 0 : i32
    %c0_i32_0 = arith.constant 0 : i32
    return %arg0, %c0_i32 : i32, i32
  }
  func.func @transform_1(%arg0: i32) -> (i32, i32) {
    %c0_i32 = arith.constant 0 : i32
    %c0_i32_0 = arith.constant 0 : i32
    %c0_i32_1 = arith.constant 0 : i32
    return %c0_i32, %c0_i32_0 : i32, i32
  }
  func.func @transform_2(%arg0: i32) -> (i32, i32) {
    %c0_i32 = arith.constant 0 : i32
    %c0_i32_0 = arith.constant 0 : i32
    %c0_i32_1 = arith.constant 0 : i32
    return %c0_i32, %c0_i32_0 : i32, i32
  }
  func.func @transform_3(%arg0: i32) -> (i32, i32) {
    %c0_i32 = arith.constant 0 : i32
    %c0_i32_0 = arith.constant 0 : i32
    %c0_i32_1 = arith.constant 0 : i32
    return %c0_i32, %c0_i32_0 : i32, i32
  }
  func.func @transform_4(%arg0: i32) -> (i32, i32) {
    %c0_i32 = arith.constant 0 : i32
    %c0_i32_0 = arith.constant 0 : i32
    %c0_i32_1 = arith.constant 0 : i32
    return %c0_i32, %c0_i32_0 : i32, i32
  }
  func.func @transform_5(%arg0: i32) -> (i32, i32) {
    %c0_i32 = arith.constant 0 : i32
    %c0_i32_0 = arith.constant 0 : i32
    return %arg0, %c0_i32 : i32, i32
  }
}

</mosaic_0001>

<bundles_post_ra>
// kernel: tpu_custom_call.1
= control target key start
LH: loop header
LB: loop body
LE: loop exit
PB: predicated region body
PF: predicated region fallthrough
CT: control target
= control target key end

     0   :  { %10 = vsyncpa [#allocation3], 0  ;;  %s607_s0 = inlined_call_operand.hbm [shape: f32[18,256], index: 0, kind: input, shape index: {}]   ;;  %s608_s1 = inlined_call_operand.hbm [shape: f32[256,128], index: 1, kind: input, shape index: {}]   ;;  %s609_s2 = inlined_call_operand.vmem [shape: f32[1,128], index: 2, kind: input, shape index: {}]   ;;  %s610_s3 = inlined_call_operand.hbm [shape: f32[128,256], index: 3, kind: input, shape index: {}]   ;;  %s611_s4 = inlined_call_operand.vmem [shape: f32[1,256], index: 4, kind: input, shape index: {}]   ;;  %s612_s5 = inlined_call_operand.hbm [shape: f32[18,256], index: 5, kind: output, shape index: {}]  }
   0x1   :  { %11 = vsyncpa [#allocation6], 0 }
   0x2   :  { %12 = vsyncpa [#allocation4], 0  ;;  %s517_s18 = smov [#allocation5]  }
   0x3   :  { %s30_s19 = sshll.u32 %s517_s18, 4  ;;  %s31_s19 = int_to_ptr.vmem [resolvable:$true] %s30_s19 }
   0x4   :  { %s439_s20 = scalar_lea.vmem %s31_s19, 4096  ;;  %p444_p1 = scmp.lt.s32.totalorder %s31_s19, %s31_s19 }
   0x5   :  { %p440_p0 = scmp.ne.s32.totalorder %s31_s19, %s439_s20  ;;  %p445_p2 = scmp.lt.s32.totalorder %s439_s20, %s439_s20 }
   0x7   :  { %p446_p3 = por %p445_p2, %p444_p1 }
   0x9   :  { %p447_p4 = pnand %p446_p3, %p440_p0 }
   0xb   :  { %450 = shalt.err (!%p447_p4)
}
   0xc   :  { %s518_s21 = smov 128   ;;  %s519_s22 = smov 8  }
   0xd   :  { %36 = dma.hbm_to_vmem [thread:$0]  %s608_s1, 4096, %s31_s19, [#allocation6], %s518_s21, %s518_s21, %s519_s22  }
   0xe   :  { %s520_s25 = smov [#allocation2]  }
   0xf   :  { %s18_s26 = sshll.u32 %s520_s25, 4  ;;  %s19_s26 = int_to_ptr.vmem [resolvable:$true] %s18_s26 }
  0x10   :  { %s459_s27 = scalar_lea.vmem %s19_s26, 768  ;;  %p464_p6 = scmp.lt.s32.totalorder %s19_s26, %s19_s26 }
  0x11   :  { %p460_p5 = scmp.ne.s32.totalorder %s19_s26, %s459_s27  ;;  %p465_p7 = scmp.lt.s32.totalorder %s459_s27, %s459_s27 }
  0x13   :  { %p466_p8 = por %p465_p7, %p464_p6 }
  0x15   :  { %p467_p9 = pnand %p466_p8, %p460_p5 }
  0x17   :  { %470 = shalt.err (!%p467_p9)
}
  0x18   :  { %s521_s28 = smov 256   ;;  %s522_s29 = smov 16  }
  0x19   :  { %24 = dma.hbm_to_vmem [thread:$0]  %s607_s0, 768, %s19_s26, [#allocation3], %s521_s28, %s521_s28, %s522_s29  }
  0x1a   :  { %s523_s1 = smov [#allocation7]  }
  0x1b   :  { %s44_s7 = sshll.u32 %s523_s1, 4  ;;  %s45_s7 = int_to_ptr.vmem [resolvable:$true] %s44_s7 }
  0x1c   :  { %s479_s8 = scalar_lea.vmem %s45_s7, 4096  ;;  %p484_p11 = scmp.lt.s32.totalorder %s45_s7, %s45_s7 }
  0x1d   :  { %p480_p10 = scmp.ne.s32.totalorder %s45_s7, %s479_s8  ;;  %p485_p12 = scmp.lt.s32.totalorder %s479_s8, %s479_s8 }
  0x1f   :  { %p486_p13 = por %p485_p12, %p484_p11 }
  0x21   :  { %p487_p0 = pnand %p486_p13, %p480_p10 }
  0x23   :  { %490 = shalt.err (!%p487_p0)
}
  0x24   :  { %50 = dma.hbm_to_vmem [thread:$0]  %s610_s3, 4096, %s45_s7, [#allocation6], %s521_s28, %s521_s28, %s522_s29  }
  0x25   :  { %511 = dma.done.wait [#allocation3], 768  }
  0x26   :  { %512 = vsyncadd [#allocation3], 4294966528 }
  0x27   :  { %513 = dma.done.wait [#allocation6], 8192  }
  0x28   :  { %514 = vsyncadd [#allocation6], 4294959104  ;;  %v99_v0 = vld [vmem:[#allocation5 + $0xf8] sm:$0xff]  ;;  %v98_v2 = vld [vmem:[#allocation5 + $0xf0] sm:$0xff] }
  0x29   :  { %v83_v1 = vld [vmem:[#allocation5 + $0x78] sm:$0xff]  ;;  %369 = vmatprep.subr.mxu0 %v99_v0  ;;  %v82_v3 = vld [vmem:[#allocation5 + $0x70] sm:$0xff]  ;;  %v97_v4 = vld [vmem:[#allocation5 + $0xe8] sm:$0xff] }
  0x2a   :  { %370 = vmatpush3.msra.mxu0 %v83_v1  ;;  %v81_v5 = vld [vmem:[#allocation5 + $0x68] sm:$0xff]  ;;  %v96_v6 = vld [vmem:[#allocation5 + $0xe0] sm:$0xff]  ;;  %v95_v8 = vld [vmem:[#allocation5 + $0xd8] sm:$0xff] }
  0x2b   :  { %371 = vmatprep.subr.mxu0 %v98_v2  ;;  %v80_v7 = vld [vmem:[#allocation5 + $0x60] sm:$0xff]  ;;  %v79_v9 = vld [vmem:[#allocation5 + $0x58] sm:$0xff]  ;;  %v94_v10 = vld [vmem:[#allocation5 + $0xd0] sm:$0xff] }
  0x2c   :  { %372 = vmatpush3.msra.mxu0 %v82_v3  ;;  %v78_v11 = vld [vmem:[#allocation5 + $0x50] sm:$0xff]  ;;  %v93_v12 = vld [vmem:[#allocation5 + $0xc8] sm:$0xff]  ;;  %v571_v13 = vld [vmem:[#allocation2 + $0x8] sm:$0xff]  ;;  %v524_v3 = vmov 0.0  }
  0x2d   :  { %373 = vmatprep.subr.mxu0 %v97_v4  ;;  %v77_v14 = vld [vmem:[#allocation5 + $0x48] sm:$0xff]  ;;  %171 = vmatprep.mubr.f32.mxu0 %v571_v13  ;;  %v92_v15 = vld [vmem:[#allocation5 + $0xc0] sm:$0xff]  ;;  %v91_v17 = vld [vmem:[#allocation5 + $0xb8] sm:$0xff] }
  0x2e   :  { %374 = vmatpush3.msra.mxu0 %v81_v5  ;;  %v76_v16 = vld [vmem:[#allocation5 + $0x40] sm:$0xff]  ;;  %v75_v18 = vld [vmem:[#allocation5 + $0x38] sm:$0xff]  ;;  %v90_v19 = vld [vmem:[#allocation5 + $0xb0] sm:$0xff]  ;;  %316 = vmatprep.mubr.f32.mxu1 %v524_v3 }
  0x2f   :  { %375 = vmatprep.subr.mxu0 %v96_v6  ;;  %v74_v20 = vld [vmem:[#allocation5 + $0x30] sm:$0xff]  ;;  %v89_v21 = vld [vmem:[#allocation5 + $0xa8] sm:$0xff]  ;;  %v88_v23 = vld [vmem:[#allocation5 + $0xa0] sm:$0xff] }
  0x30   :  { %376 = vmatpush3.msra.mxu0 %v80_v7  ;;  %v73_v22 = vld [vmem:[#allocation5 + $0x28] sm:$0xff]  ;;  %v72_v24 = vld [vmem:[#allocation5 + $0x20] sm:$0xff]  ;;  %v87_v25 = vld [vmem:[#allocation5 + $0x98] sm:$0xff] }
  0x31   :  { %377 = vmatprep.subr.mxu0 %v95_v8  ;;  %v71_v26 = vld [vmem:[#allocation5 + $0x18] sm:$0xff]  ;;  %v86_v27 = vld [vmem:[#allocation5 + $0x90] sm:$0xff]  ;;  %v85_v29 = vld [vmem:[#allocation5 + $0x88] sm:$0xff] }
  0x32   :  { %378 = vmatpush3.msra.mxu0 %v79_v9  ;;  %v70_v28 = vld [vmem:[#allocation5 + $0x10] sm:$0xff]  ;;  %v69_v30 = vld [vmem:[#allocation5 + $0x8] sm:$0xff]  ;;  %v84_v31 = vld [vmem:[#allocation5 + $0x80] sm:$0xff] }
  0x33   :  { %379 = vmatprep.subr.mxu0 %v94_v10  ;;  %v68_v32 = vld [vmem:[#allocation5] sm:$0xff]  ;;  %v574_v33 = vld [vmem:[#allocation2] sm:$0xff]  ;;  %v576_v34 = vld [vmem:[#allocation2 + $0x18] sm:$0xff] }
  0x34   :  { %380 = vmatpush3.msra.mxu0 %v78_v11  ;;  %v580_v35 = vld [vmem:[#allocation2 + $0x10] sm:$0xff]  ;;  %v582_v36 = vld [vmem:[#allocation2 + $0x28] sm:$0xff]  ;;  %v586_v37 = vld [vmem:[#allocation2 + $0x20] sm:$0xff] }
  0x35   :  { %381 = vmatprep.subr.mxu0 %v93_v12  ;;  %v239_v38 = vld [vmem:[#allocation7 + $0xf8] sm:$0xff]  ;;  %v238_v39 = vld [vmem:[#allocation7 + $0xf0] sm:$0xff]  ;;  %v237_v40 = vld [vmem:[#allocation7 + $0xe8] sm:$0xff] }
  0x36   :  { %382 = vmatpush3.msra.mxu0 %v77_v14  ;;  %252 = vmatprep.subr.mxu1 %v239_v38  ;;  %v236_v41 = vld [vmem:[#allocation7 + $0xe0] sm:$0xff]  ;;  %v235_v42 = vld [vmem:[#allocation7 + $0xd8] sm:$0xff]  ;;  %v234_v43 = vld [vmem:[#allocation7 + $0xd0] sm:$0xff] }
  0x37   :  { %383 = vmatprep.subr.mxu0 %v92_v15  ;;  %253 = vmatpush1.msra.mxu1 %v238_v39  ;;  %v233_v44 = vld [vmem:[#allocation7 + $0xc8] sm:$0xff]  ;;  %v232_v45 = vld [vmem:[#allocation7 + $0xc0] sm:$0xff]  ;;  %v231_v46 = vld [vmem:[#allocation7 + $0xb8] sm:$0xff] }
  0x38   :  { %384 = vmatpush3.msra.mxu0 %v76_v16  ;;  %254 = vmatprep.subr.mxu1 %v237_v40  ;;  %v230_v47 = vld [vmem:[#allocation7 + $0xb0] sm:$0xff]  ;;  %v229_v48 = vld [vmem:[#allocation7 + $0xa8] sm:$0xff]  ;;  %v228_v49 = vld [vmem:[#allocation7 + $0xa0] sm:$0xff] }
  0x39   :  { %385 = vmatprep.subr.mxu0 %v91_v17  ;;  %255 = vmatpush1.msra.mxu1 %v236_v41  ;;  %v227_v50 = vld [vmem:[#allocation7 + $0x98] sm:$0xff]  ;;  %v226_v51 = vld [vmem:[#allocation7 + $0x90] sm:$0xff]  ;;  %v225_v52 = vld [vmem:[#allocation7 + $0x88] sm:$0xff]  ;;  %v242_v41 = vlaneseq }
  0x3a   :  { %386 = vmatpush3.msra.mxu0 %v75_v18  ;;  %256 = vmatprep.subr.mxu1 %v235_v42  ;;  %v224_v53 = vld [vmem:[#allocation7 + $0x80] sm:$0xff]  ;;  %v223_v54 = vld [vmem:[#allocation7 + $0x78] sm:$0xff]  ;;  %v222_v55 = vld [vmem:[#allocation7 + $0x70] sm:$0xff] }
  0x3b   :  { %387 = vmatprep.subr.mxu0 %v90_v19  ;;  %257 = vmatpush1.msra.mxu1 %v234_v43  ;;  %v221_v56 = vld [vmem:[#allocation7 + $0x68] sm:$0xff]  ;;  %v220_v57 = vld [vmem:[#allocation7 + $0x60] sm:$0xff]  ;;  %v219_v58 = vld [vmem:[#allocation7 + $0x58] sm:$0xff]  ;;  %v243_v42 = vshrl.u32 %v242_v41, 7 }
  0x3c   :  { %388 = vmatpush3.msra.mxu0 %v74_v20  ;;  %258 = vmatprep.subr.mxu1 %v233_v44  ;;  %v218_v59 = vld [vmem:[#allocation7 + $0x50] sm:$0xff]  ;;  %v217_v60 = vld [vmem:[#allocation7 + $0x48] sm:$0xff]  ;;  %v216_v61 = vld [vmem:[#allocation7 + $0x40] sm:$0xff] }
  0x3d   :  { %389 = vmatprep.subr.mxu0 %v89_v21  ;;  %259 = vmatpush1.msra.mxu1 %v232_v45  ;;  %v215_v62 = vld [vmem:[#allocation7 + $0x38] sm:$0xff]  ;;  %v214_v63 = vld [vmem:[#allocation7 + $0x30] sm:$0xff]  ;;  %v213_v0 = vld [vmem:[#allocation7 + $0x28] sm:$0xff]  ;;  %v244_v43 = vsub.s32 0, %v243_v42  ;;  %v248_v45 = vsub.s32 1, %v243_v42 }
  0x3e   :  { %390 = vmatpush3.msra.mxu0 %v73_v22  ;;  %260 = vmatprep.subr.mxu1 %v231_v46  ;;  %v212_v1 = vld [vmem:[#allocation7 + $0x20] sm:$0xff]  ;;  %v211_v2 = vld [vmem:[#allocation7 + $0x18] sm:$0xff]  ;;  %v210_v4 = vld [vmem:[#allocation7 + $0x10] sm:$0xff] }
  0x3f   :  { %391 = vmatprep.subr.mxu0 %v88_v23  ;;  %261 = vmatpush1.msra.mxu1 %v230_v47  ;;  %v209_v5 = vld [vmem:[#allocation7 + $0x8] sm:$0xff]  ;;  %v208_v6 = vld [vmem:[#allocation7] sm:$0xff]  ;;  %v365_v8 = vld [vmem:[%s609_s2] ss:$0 sm:$0xff] }
  0x40   :  { %392 = vmatpush3.msra.mxu0 %v72_v24  ;;  %262 = vmatprep.subr.mxu1 %v229_v48  ;;  %v240_v44 = vld [vmem:[%s611_s4] sm:$0x3]  ;;  %s525_s4 = smov [#allocation8]  }
  0x41   :  { %393 = vmatprep.subr.mxu0 %v87_v25  ;;  %263 = vmatpush1.msra.mxu1 %v228_v49  ;;  %v245_v46 = vrot.slane %v240_v44, %v244_v43  ;;  %v249_v47 = vrot.slane %v240_v44, %v248_v45  ;;  %s352_s12 = sshll.u32 %s525_s4, 4  ;;  %s353_s12 = int_to_ptr.vmem [resolvable:$true] %s352_s12 }
  0x42   :  { %394 = vmatpush3.msra.mxu0 %v71_v26  ;;  %264 = vmatprep.subr.mxu1 %v227_v50  ;;  %s491_s13 = scalar_lea.vmem %s353_s12, 768  ;;  %p496_p2 = scmp.lt.s32.totalorder %s353_s12, %s353_s12 }
  0x43   :  { %395 = vmatprep.subr.mxu0 %v86_v27  ;;  %265 = vmatpush1.msra.mxu1 %v226_v51  ;;  %p492_p1 = scmp.ne.s32.totalorder %s353_s12, %s491_s13  ;;  %p497_p3 = scmp.lt.s32.totalorder %s491_s13, %s491_s13 }
  0x44   :  { %396 = vmatpush3.msra.mxu0 %v70_v28  ;;  %266 = vmatprep.subr.mxu1 %v225_v52 }
  0x45   :  { %397 = vmatprep.subr.mxu0 %v85_v29  ;;  %267 = vmatpush1.msra.mxu1 %v224_v53  ;;  %p498_p4 = por %p497_p3, %p496_p2 }
  0x46   :  { %398 = vmatpush3.msra.mxu0 %v69_v30  ;;  %268 = vmatprep.subr.mxu1 %v223_v54 }
  0x47   :  { %399 = vmatprep.subr.mxu0 %v84_v31  ;;  %269 = vmatpush1.msra.mxu1 %v222_v55  ;;  %p499_p5 = pnand %p498_p4, %p492_p1 }
  0x48   :  { %400 = vmatpush3.msra.mxu0 %v68_v32  ;;  %270 = vmatprep.subr.mxu1 %v221_v56 }
  0x49   :  { %172 = vmatmul.mubr.f32.vlgmr.msra.gmra.mxu0 %v574_v33  ;;  %271 = vmatpush1.msra.mxu1 %v220_v57 }
  0x4a   :  { %176 = vmatprep.mubr.f32.mxu0 %v576_v34  ;;  %272 = vmatprep.subr.mxu1 %v219_v58 }
  0x4b   :  { %273 = vmatpush1.msra.mxu1 %v218_v59 }
  0x4c   :  { %274 = vmatprep.subr.mxu1 %v217_v60 }
  0x4d   :  { %177 = vmatmul.mubr.f32.gmra.mxu0 %v580_v35  ;;  %275 = vmatpush1.msra.mxu1 %v216_v61 }
  0x4e   :  { %181 = vmatprep.mubr.f32.mxu0 %v582_v36  ;;  %276 = vmatprep.subr.mxu1 %v215_v62 }
  0x4f   :  { %277 = vmatpush1.msra.mxu1 %v214_v63 }
  0x50   :  { %278 = vmatprep.subr.mxu1 %v213_v0 }
  0x51   :  { %182 = vmatmul.mubr.f32.gmra.mxu0 %v586_v37  ;;  %279 = vmatpush1.msra.mxu1 %v212_v1 }
  0x52   :  { %280 = vmatprep.subr.mxu1 %v211_v2 }
  0x53   :  { %281 = vmatpush1.msra.mxu1 %v210_v4 }
  0x54   :  { %282 = vmatprep.subr.mxu1 %v209_v5 }
  0x55   :  { %283 = vmatpush1.msra.mxu1 %v208_v6 }
 0x109   :  { %v401_v7 = vpop.f32.mrf.mxu0 }
 0x10b   :  { %v402_v9 = vpop.f32.mrf.mxu0 }
 0x10c   :  { %v403_v10 = vadd.f32 %v402_v9, %v401_v7 }
 0x10d   :  { %v404_v11 = vpop.f32.mrf.mxu0 }
 0x10e   :  { %v174_v12 = vadd.f32 %v403_v10, %v365_v8 }
 0x10f   :  { %v405_v14 = vpop.f32.mrf.mxu0 }
 0x110   :  { %v366_v15 = vmul.f32 -1.442695, %v174_v12  ;;  %v406_v16 = vadd.f32 %v405_v14, %v404_v11 }
 0x111   :  { %v407_v17 = vpop.f32.mrf.mxu0 }
 0x112   :  { %419 = vpow2.f32 %v366_v15  ;;  %v179_v18 = vadd.f32 %v406_v16, %v365_v8 }
 0x113   :  { %v408_v19 = vpop.f32.mrf.mxu0 }
 0x114   :  { %v367_v20 = vmul.f32 -1.442695, %v179_v18  ;;  %v409_v21 = vadd.f32 %v408_v19, %v407_v17 }
 0x116   :  { %421 = vpow2.f32 %v367_v20  ;;  %v184_v22 = vadd.f32 %v409_v21, %v365_v8 }
 0x118   :  { %v368_v23 = vmul.f32 -1.442695, %v184_v22 }
 0x11a   :  { %423 = vpow2.f32 %v368_v23 }
 0x11f   :  { %v420_v24 = vpop.eup %419 }
 0x120   :  { %v196_v25 = vadd.f32 1.0, %v420_v24 }
 0x122   :  { %425 = vrcp.f32 %v196_v25 }
 0x123   :  { %v422_v26 = vpop.eup %421 }
 0x124   :  { %v197_v27 = vadd.f32 1.0, %v422_v26 }
 0x126   :  { %427 = vrcp.f32 %v197_v27 }
 0x127   :  { %v424_v28 = vpop.eup %423 }
 0x128   :  { %v198_v29 = vadd.f32 1.0, %v424_v28 }
 0x12a   :  { %429 = vrcp.f32 %v198_v29 }
 0x12f   :  { %v426_v30 = vpop.eup %425 }
 0x130   :  { %v205_v31 = vmul.f32 %v426_v30, %v174_v12 }
 0x132   :  { %317 = vmatmul.mubr.f32.vlgmr.msra.gmra.mxu1 %v205_v31 }
 0x133   :  { %v428_v32 = vpop.eup %427  ;;  %322 = vmatprep.mubr.f32.mxu1 %v524_v3 }
 0x134   :  { %v206_v38 = vmul.f32 %v428_v32, %v179_v18 }
 0x136   :  { %323 = vmatmul.mubr.f32.gmra.mxu1 %v206_v38 }
 0x137   :  { %v430_v39 = vpop.eup %429  ;;  %328 = vmatprep.mubr.f32.mxu1 %v524_v3 }
 0x138   :  { %v207_v40 = vmul.f32 %v430_v39, %v184_v22 }
 0x13a   :  { %329 = vmatmul.mubr.f32.gmra.mxu1 %v207_v40 }
 0x1f2   :  { %v318_v48 = vpop.f32.mrf.mxu1 }
 0x1f3   :  { %v319_v49 = vadd.f32 %v318_v48, %v245_v46 }
 0x1f4   :  { %v320_v50 = vpop.f32.mrf.mxu1 }
 0x1f5   :  { %v335_v51 = vadd.f32 %v319_v49, %v574_v33  ;;  %v321_v52 = vadd.f32 %v320_v50, %v249_v47 }
 0x1f6   :  { %v324_v53 = vpop.f32.mrf.mxu1 }
 0x1f7   :  { %341 = vst [vmem:[#allocation8] sm:$0xff] %v335_v51  ;;  %v336_v54 = vadd.f32 %v321_v52, %v571_v13  ;;  %v325_v55 = vadd.f32 %v324_v53, %v245_v46 }
 0x1f8   :  { %v326_v56 = vpop.f32.mrf.mxu1 }
 0x1f9   :  { %342 = vst [vmem:[#allocation8 + $0x8] sm:$0xff] %v336_v54  ;;  %v337_v57 = vadd.f32 %v325_v55, %v580_v35  ;;  %v327_v58 = vadd.f32 %v326_v56, %v249_v47 }
 0x1fa   :  { %v330_v59 = vpop.f32.mrf.mxu1 }
 0x1fb   :  { %343 = vst [vmem:[#allocation8 + $0x10] sm:$0xff] %v337_v57  ;;  %v338_v60 = vadd.f32 %v327_v58, %v576_v34  ;;  %v331_v61 = vadd.f32 %v330_v59, %v245_v46 }
 0x1fc   :  { %v332_v62 = vpop.f32.mrf.mxu1 }
 0x1fd   :  { %344 = vst [vmem:[#allocation8 + $0x18] sm:$0xff] %v338_v60  ;;  %v339_v33 = vadd.f32 %v331_v61, %v586_v37  ;;  %v333_v63 = vadd.f32 %v332_v62, %v249_v47 }
 0x1ff   :  { %345 = vst [vmem:[#allocation8 + $0x20] sm:$0xff] %v339_v33  ;;  %v340_v13 = vadd.f32 %v333_v63, %v582_v36 }
 0x201   :  { %346 = vst [vmem:[#allocation8 + $0x28] sm:$0xff] %v340_v13 }
 0x202   :  { %502 = shalt.err (!%p499_p5)
}
 0x203   :  { %358 = dma.vmem_to_hbm [thread:$0]  %s353_s12, 768, %s612_s5, [#allocation4], %s521_s28, %s521_s28, %s522_s29  }
 0x204   :  { %515 = dma.done.wait [#allocation4], 768  }
 0x205   :  { %516 = vsyncadd [#allocation4], 4294966528 }
 0x206   :  { %362 = vsyncpa [#allocation3], 1 }
 0x207   :  { %363 = vsyncpa [#allocation6], 1 }
 0x208   :  { %364 = vsyncpa [#allocation4], 1 }

</bundles_post_ra>
